<compile_context>
chip_gen: v7x
topology: tpu7x:2x2x1
jax: 0.10.0
libtpu: 0.0.40
codegen_flags: <defaults>
</compile_context>

<pallas_src>
import jax
import jax.numpy as jnp
from jax.experimental import pallas as pl
from jax.experimental.pallas import tpu as pltpu


def _mish_kernel(x_ref, o_ref):
    x = x_ref[...]
    xf = x.astype(jnp.float32)
    # tanh(softplus(x)) = ((1+t)^2 - 1) / ((1+t)^2 + 1) = (t^2 + 2t) / (t^2 + 2t + 2),
    # with t = exp(x).  One EUP exp + one EUP reciprocal (inside the divide); the
    # squares/adds ride in the free VALU slots.
    t = jnp.exp(xf)
    num = t * (t + 2.0)
    y = xf * (num / (num + 2.0))
    # exp(x) overflows for x ≳ 88 (inf/inf -> NaN in the dead branch); for x > 20
    # tanh(softplus(x)) == 1.0 in f32, so mish(x) == x there.
    y = jnp.where(xf > 20.0, xf, y)
    o_ref[...] = y.astype(o_ref.dtype)


def mish_pallas(x: jax.Array, *, target_block_bytes: int = 2 << 20) -> jax.Array:
    """Elementwise Mish via a Pallas TPU kernel. Accepts any shape/dtype."""
    orig_shape = x.shape
    orig_dtype = x.dtype
    n = x.size
    if n == 0:
        return x

    lanes = 128
    itemsize = jnp.dtype(orig_dtype).itemsize
    rows = pl.cdiv(n, lanes)

    # Pad only up to a multiple of the 128-lane width (at most 127 elements).
    n_lane_padded = rows * lanes
    x_flat = jnp.ravel(x)
    if n_lane_padded != n:
        x_flat = jnp.pad(x_flat, (0, n_lane_padded - n))
    x2d = x_flat.reshape(rows, lanes)

    # Dtype-aware tile sizing: ~target_block_bytes per buffer (1-4 MiB sweet spot).
    # 2 buffers/array x 2 arrays x 2 MiB = 8 MiB scoped VMEM -> fits the default
    # limit on v5e (16 MiB) and v6e/v7x (32 MiB) with no vmem_limit override.
    tile_rows = max(8, (target_block_bytes // (lanes * itemsize)) // 8 * 8)
    if rows <= tile_rows:
        tile_rows = rows                      # single block == full extent
        grid = (1,)
    else:
        grid = (pl.cdiv(rows, tile_rows),)    # ragged last block handled by Pallas

    cost = pl.CostEstimate(
        flops=6 * n,
        transcendentals=2 * n,
        bytes_accessed=2 * n * itemsize,
    )

    out2d = pl.pallas_call(
        _mish_kernel,
        out_shape=jax.ShapeDtypeStruct((rows, lanes), orig_dtype),
        grid=grid,
        in_specs=[pl.BlockSpec((tile_rows, lanes), lambda i: (i, 0))],
        out_specs=pl.BlockSpec((tile_rows, lanes), lambda i: (i, 0)),
        compiler_params=pltpu.CompilerParams(
            dimension_semantics=("parallel",),   # megacore sharding on v7x
        ),
        cost_estimate=cost,
    )(x2d)

    out_flat = out2d.reshape(-1)
    if n_lane_padded != n:
        out_flat = out_flat[:n]
    return out_flat.reshape(orig_shape)


def mish_ref(x: jax.Array) -> jax.Array:
    xf = x.astype(jnp.float32)
    return (xf * jnp.tanh(jax.nn.softplus(xf))).astype(x.dtype)


if __name__ == "__main__":
    key = jax.random.PRNGKey(0)

    # Small NCHW input, as a PyTorch conv-style tensor would be.
    x = jax.random.normal(key, (2, 4, 16, 16), dtype=jnp.float32)
    out = jax.block_until_ready(mish_pallas(x))
    ref = mish_ref(x)
    assert out.shape == x.shape and out.dtype == x.dtype
    assert jnp.allclose(out, ref, atol=1e-5, rtol=1e-5), float(
        jnp.max(jnp.abs(out - ref))
    )

    # Tiny ragged shape (not a multiple of 128) to exercise the lane-pad path.
    k2 = jax.random.split(key)[0]
    x2 = jax.random.normal(k2, (3, 7, 5), dtype=jnp.float32) * 10.0
    out2 = jax.block_until_ready(mish_pallas(x2))
    ref2 = mish_ref(x2)
    assert out2.shape == x2.shape and out2.dtype == x2.dtype
    assert jnp.allclose(out2, ref2, atol=1e-5, rtol=1e-5), float(
        jnp.max(jnp.abs(out2 - ref2))
    )

    print("KERNEL_OK")
</pallas_src>

<mosaic_0001>
module attributes {stable_mosaic.version = 11 : i64} {
  func.func @_mish_kernel(%arg0: i32, %arg1: memref<16x128xf32, #tpu.memory_space<vmem>>, %arg2: memref<16x128xf32, #tpu.memory_space<vmem>>) attributes {dimension_semantics = [#tpu.dimension_semantics<parallel>], iteration_bounds = array<i64: 1>, scalar_prefetch = 0 : i64, scratch_operands = 0 : i64, tpu.core_type = #tpu.core_type<tc>, window_params = [{transform_indices = @transform_0, window_bounds = array<i64: 16, 128>}, {transform_indices = @transform_1, window_bounds = array<i64: 16, 128>}]} {
    %c0 = arith.constant 0 : index
    %c0_0 = arith.constant 0 : index
    %0 = vector.load %arg1[%c0, %c0_0] : memref<16x128xf32, #tpu.memory_space<vmem>>, vector<16x128xf32>
    %1 = math.exp %0 : vector<16x128xf32>
    %cst = arith.constant 2.000000e+00 : f32
    %2 = vector.broadcast %cst : f32 to vector<16x128xf32>
    %3 = arith.addf %1, %2 : vector<16x128xf32>
    %4 = arith.mulf %1, %3 : vector<16x128xf32>
    %cst_1 = arith.constant 2.000000e+00 : f32
    %5 = vector.broadcast %cst_1 : f32 to vector<16x128xf32>
    %6 = arith.addf %4, %5 : vector<16x128xf32>
    %7 = arith.divf %4, %6 : vector<16x128xf32>
    %8 = arith.mulf %0, %7 : vector<16x128xf32>
    %cst_2 = arith.constant 2.000000e+01 : f32
    %9 = vector.broadcast %cst_2 : f32 to vector<16x128xf32>
    %10 = arith.cmpf ogt, %0, %9 : vector<16x128xf32>
    %11 = arith.select %10, %0, %8 : vector<16x128xi1>, vector<16x128xf32>
    %c0_3 = arith.constant 0 : index
    %c0_4 = arith.constant 0 : index
    %12 = vector.load %arg2[%c0_3, %c0_4] : memref<16x128xf32, #tpu.memory_space<vmem>>, vector<16x128xf32>
    tpu.vector_store %arg2[%c0_3, %c0_4], %11 {strides = array<i32>} : memref<16x128xf32, #tpu.memory_space<vmem>>, vector<16x128xf32>,
    return
  }
  func.func @transform_0(%arg0: i32) -> (i32, i32) {
    %c0_i32 = arith.constant 0 : i32
    %c0_i32_0 = arith.constant 0 : i32
    return %arg0, %c0_i32 : i32, i32
  }
  func.func @transform_1(%arg0: i32) -> (i32, i32) {
    %c0_i32 = arith.constant 0 : i32
    %c0_i32_0 = arith.constant 0 : i32
    return %arg0, %c0_i32 : i32, i32
  }
}

</mosaic_0001>

<bundles_post_ra>
// kernel: tpu_custom_call.1
= control target key start
LH: loop header
LB: loop body
LE: loop exit
PB: predicated region body
PF: predicated region fallthrough
CT: control target
= control target key end

     0   :  { %6 = vsyncpa [#allocation3], 0  ;;  %s168_s0 = inlined_call_operand.hbm [shape: f32[16,128], index: 0, kind: input, shape index: {}]   ;;  %s169_s1 = inlined_call_operand.hbm [shape: f32[16,128], index: 1, kind: output, shape index: {}]  }
   0x1   :  { %7 = vsyncpa [#allocation4], 0  ;;  %s124_s6 = smov [#allocation2]   ;;  %s76_s10 = scalar_lea.hbm %s168_s0, 256 }
   0x2   :  { %s13_s7 = sshll.u32 %s124_s6, 4  ;;  %p77_p0 = scmp.ne.s32.totalorder %s168_s0, %s76_s10  ;;  %s14_s7 = int_to_ptr.vmem [resolvable:$true] %s13_s7 }
   0x3   :  { %p80_p1 = scmp.lt.u32.totalorder %s76_s10, %s168_s0 }
   0x5   :  { %p82_p2 = pnand %p80_p1, %p77_p0 }
   0x7   :  { %85 = shalt.err (!%p82_p2)
}
   0x8   :  { %s86_s15 = scalar_lea.vmem %s14_s7, 256  ;;  %p91_p4 = scmp.lt.s32.totalorder %s14_s7, %s14_s7 }
   0x9   :  { %p87_p3 = scmp.ne.s32.totalorder %s14_s7, %s86_s15  ;;  %p92_p5 = scmp.lt.s32.totalorder %s86_s15, %s86_s15 }
   0xb   :  { %p93_p6 = por %p92_p5, %p91_p4 }
   0xd   :  { %p94_p7 = pnand %p93_p6, %p87_p3 }
   0xf   :  { %97 = shalt.err (!%p94_p7)
}
  0x10   :  { %s125_s16 = smov 128   ;;  %s126_s17 = smov 8  }
  0x11   :  { %19 = dma.hbm_to_vmem [thread:$0]  %s168_s0, 256, %s14_s7, [#allocation3], %s125_s16, %s125_s16, %s126_s17  }
  0x12   :  { %120 = dma.done.wait [#allocation3], 256  }
  0x13   :  { %121 = vsyncadd [#allocation3], 4294967040  ;;  %v23_v0 = vld [vmem:[#allocation2] sm:$0xff]  ;;  %v24_v1 = vld [vmem:[#allocation2 + $0x8] sm:$0xff]  ;;  %s127_s0 = smov [#allocation5]  }
  0x14   :  { %v25_v2 = vmul.f32 1.442695, %v23_v0  ;;  %v27_v3 = vmul.f32 1.442695, %v24_v1  ;;  %vm41_vm0 = vcmp.gt.f32.partialorder %v23_v0, 20.0  ;;  %s52_s20 = sshll.u32 %s127_s0, 4  ;;  %s53_s20 = int_to_ptr.vmem [resolvable:$true] %s52_s20 }
  0x15   :  { %vm42_vm1 = vcmp.gt.f32.partialorder %v24_v1, 20.0  ;;  %s98_s21 = scalar_lea.vmem %s53_s20, 256  ;;  %p103_p9 = scmp.lt.s32.totalorder %s53_s20, %s53_s20 }
  0x16   :  { %68 = vpow2.f32 %v25_v2  ;;  %p99_p8 = scmp.ne.s32.totalorder %s53_s20, %s98_s21  ;;  %p104_p10 = scmp.lt.s32.totalorder %s98_s21, %s98_s21 }
  0x17   :  { %70 = vpow2.f32 %v27_v3 }
  0x18   :  { %p105_p11 = por %p104_p10, %p103_p9 }
  0x1a   :  { %p106_p12 = pnand %p105_p11, %p99_p8 }
  0x20   :  { %v69_v4 = vpop.eup %68 }
  0x21   :  { %v71_v5 = vpop.eup %70  ;;  %v29_v6 = vadd.f32 2.0, %v69_v4 }
  0x22   :  { %v30_v7 = vadd.f32 2.0, %v71_v5 }
  0x23   :  { %v31_v8 = vmul.f32 %v69_v4, %v29_v6 }
  0x24   :  { %v32_v9 = vmul.f32 %v71_v5, %v30_v7 }
  0x25   :  { %v33_v10 = vadd.f32 2.0, %v31_v8 }
  0x26   :  { %v34_v11 = vadd.f32 2.0, %v32_v9 }
  0x27   :  { %72 = vrcp.f32 %v33_v10 }
  0x28   :  { %74 = vrcp.f32 %v34_v11 }
  0x31   :  { %v73_v12 = vpop.eup %72 }
  0x32   :  { %v75_v13 = vpop.eup %74  ;;  %v36_v14 = vmul.f32 %v73_v12, %v31_v8 }
  0x33   :  { %v38_v15 = vmul.f32 %v75_v13, %v32_v9 }
  0x34   :  { %v39_v16 = vmul.f32 %v36_v14, %v23_v0 }
  0x35   :  { %v40_v17 = vmul.f32 %v38_v15, %v24_v1 }
  0x36   :  { %v43_v18 = vsel %vm41_vm0, %v23_v0, %v39_v16 }
  0x37   :  { %45 = vst [vmem:[#allocation5] sm:$0xff] %v43_v18  ;;  %v44_v19 = vsel %vm42_vm1, %v24_v1, %v40_v17 }
  0x38   :  { %46 = vst [vmem:[#allocation5 + $0x8] sm:$0xff] %v44_v19 }
  0x39   :  { %109 = shalt.err (!%p106_p12)
}
  0x3a   :  { %s110_s24 = scalar_lea.hbm %s169_s1, 256 }
  0x3b   :  { %p111_p13 = scmp.ne.s32.totalorder %s169_s1, %s110_s24  ;;  %p114_p0 = scmp.lt.u32.totalorder %s110_s24, %s169_s1 }
  0x3d   :  { %p116_p1 = pnand %p114_p0, %p111_p13 }
  0x3f   :  { %119 = shalt.err (!%p116_p1)
}
  0x40   :  { %58 = dma.vmem_to_hbm [thread:$0]  %s53_s20, 256, %s169_s1, [#allocation4], %s125_s16, %s125_s16, %s126_s17  }
  0x41   :  { %122 = dma.done.wait [#allocation4], 256  }
  0x42   :  { %123 = vsyncadd [#allocation4], 4294967040 }
  0x43   :  { %62 = vsyncpa [#allocation3], 1 }
  0x44   :  { %63 = vsyncpa [#allocation4], 1 }

</bundles_post_ra>
